<compile_context>
chip_gen: v6e
topology: v6e:2x2x1
jax: 0.10.0
libtpu: 0.0.40
codegen_flags: <defaults>
</compile_context>

<pallas_src>
import jax
import jax.numpy as jnp
from jax import lax
from jax.experimental import pallas as pl
from jax.experimental.pallas import tpu as pltpu

_LANE = 128
_SUBLANE = 8


def _round_up(n, m):
    return ((n + m - 1) // m) * m


def prepare_fused_weight(w_mu, w_lv, dtype=None):
    """One-time (init-time) fusion of the two projection weights.

    Concatenates W_mu / W_lv (each (O, K)) into a single (O_pad, K) weight with
    the output-channel axis zero-padded to a multiple of 128 lanes. Do this
    ONCE outside the step function: with tiny batches the kernel is weight-
    streaming bound and re-materializing the fused weight per call roughly
    doubles HBM traffic.

    `dtype` optionally downcasts the streamed weight (e.g. bf16 on v6e/v7x);
    accumulation inside the kernel stays f32 either way.
    """
    out_channels, in_channels = w_mu.shape
    assert w_lv.shape == (out_channels, in_channels)
    w = jnp.concatenate([w_mu, w_lv], axis=0)                      # (2*O, K)
    o_pad = _round_up(2 * out_channels, _LANE)
    if o_pad != 2 * out_channels:
        w = jnp.pad(w, ((0, o_pad - 2 * out_channels), (0, 0)))    # (O_pad, K)
    if dtype is not None:
        w = w.astype(dtype)
    return w, out_channels


def _vmem_budgets():
    """Generation-aware (tile budget, explicit scoped-VMEM limit) in bytes."""
    capacity = None
    try:
        info = pltpu.get_tpu_info()
        for attr in ("vmem_capacity_bytes", "vmem_bytes", "vmem_size_bytes"):
            v = getattr(info, attr, None)
            if v:
                capacity = int(v)
                break
    except Exception:
        capacity = None
    if capacity is None:
        capacity = 64 * 1024 * 1024   # v7x per-TC VMEM: safe floor everywhere
    # ~60% of physical VMEM for our tiles; ~75% as the explicit scoped limit
    # (headroom for the resident output and Mosaic internal scratch).
    return int(capacity * 0.60), int(capacity * 0.75)


def _compressor_kernel(x_ref, w_ref, out_ref):
    k = pl.program_id(1)                       # reduction step (last grid axis)

    @pl.when(k == 0)
    def _():
        out_ref[...] = jnp.zeros_like(out_ref)

    # (B, tk) contracted with (tn, tk) on the last dims -> (B, tn);
    # y = x @ W.T without materializing any transpose.
    out_ref[...] += lax.dot_general(
        x_ref[...], w_ref[...],
        dimension_numbers=(((1,), (1,)), ((), ())),
        preferred_element_type=jnp.float32,
    )


def _in_spec(block_shape, index_map, cycles):
    """BlockSpec that drops double-buffering when its block never changes."""
    if not cycles:
        try:
            return pl.BlockSpec(block_shape, index_map,
                                pipeline_mode=pl.Buffered(1))
        except (TypeError, AttributeError):    # older BlockSpec signature
            pass
    return pl.BlockSpec(block_shape, index_map)


def linear_feature_compressor(x, w_fused, out_channels):
    """Hot path: x (B, K) projected with the pre-fused, pre-padded (O_pad, K) weight.

    Returns (mu, logvar), each (B, out_channels), matching the bias-free
    nn.Linear pair: mu = x @ W_mu.T, logvar = x @ W_lv.T.
    """
    B, K = x.shape
    o_pad, Kw = w_fused.shape
    assert Kw == K and o_pad % _LANE == 0 and 2 * out_channels <= o_pad
    result_dtype = x.dtype

    # Match streamed dtypes (weight may have been downcast to bf16 at init).
    if x.dtype != w_fused.dtype:
        x = x.astype(w_fused.dtype)

    # Pad the batch to a full sublane so output stores are unmasked.
    b_pad = _round_up(max(B, 1), _SUBLANE)
    if b_pad != B:
        x = jnp.pad(x, ((0, b_pad - B), (0, 0)))

    # ---- Tile selection ----------------------------------------------------
    budget, vmem_limit = _vmem_budgets()
    x_bytes = x.dtype.itemsize
    w_bytes = w_fused.dtype.itemsize

    # N tile: one lane-dense tile for small outputs; split wide outputs so the
    # megacore (v7x: 2 TensorCores) has a parallel axis to shard.
    tn = o_pad
    if o_pad >= 512 and (o_pad // 2) % 256 == 0:
        tn = o_pad // 2
    tk = K

    def footprint(tk_, tn_):
        k_steps = K // tk_
        n_steps = o_pad // tn_
        x_bufs = 2 if k_steps > 1 else 1                     # x cycles with k only
        w_bufs = 2 if (k_steps > 1 or n_steps > 1) else 1    # w cycles with n and k
        o_bufs = 2 if n_steps > 1 else 1
        return (x_bufs * b_pad * tk_ * x_bytes
                + w_bufs * tn_ * tk_ * w_bytes
                + o_bufs * b_pad * tn_ * 4)

    while footprint(tk, tn) > budget:
        can_halve_tk = tk % (2 * _LANE) == 0      # tk/2 stays a 128-multiple
        can_halve_tn = tn % (2 * _LANE) == 0
        if can_halve_tk and (tk >= tn or not can_halve_tn):
            tk //= 2
        elif can_halve_tn:
            tn //= 2
        else:
            raise ValueError(
                f"LinearFeatureCompressor tile footprint {footprint(tk, tn)} B "
                f"exceeds the VMEM budget {budget} B and (tk={tk}, tn={tn}) "
                f"cannot be split further (K={K}, O_pad={o_pad}).")

    k_steps = K // tk
    n_steps = o_pad // tn
    grid = (n_steps, k_steps)                     # reduction axis last

    def _run(allow_single_buffer):
        x_cycles = (k_steps > 1) or not allow_single_buffer
        w_cycles = (k_steps > 1 or n_steps > 1) or not allow_single_buffer
        return pl.pallas_call(
            _compressor_kernel,
            out_shape=jax.ShapeDtypeStruct((b_pad, o_pad), jnp.float32),
            grid_spec=pltpu.PrefetchScalarGridSpec(
                num_scalar_prefetch=0,
                grid=grid,
                in_specs=[
                    _in_spec((b_pad, tk), lambda n, k: (0, k), cycles=x_cycles),
                    _in_spec((tn, tk), lambda n, k: (n, k), cycles=w_cycles),
                ],
                out_specs=pl.BlockSpec((b_pad, tn), lambda n, k: (0, n)),
            ),
            compiler_params=pltpu.CompilerParams(
                dimension_semantics=("parallel", "arbitrary"),
                vmem_limit_bytes=vmem_limit,
            ),
        )(x, w_fused)

    try:
        fused_out = _run(allow_single_buffer=True)
    except Exception:
        # Defensive fallback: identical semantics with default double-buffering
        # if this runtime rejects pl.Buffered(1).
        fused_out = _run(allow_single_buffer=False)

    mu = fused_out[:B, :out_channels].astype(result_dtype)
    logvar = fused_out[:B, out_channels:2 * out_channels].astype(result_dtype)
    return mu, logvar


if __name__ == "__main__":
    # Shapes consistent with the module: feats is NCHW (B, C, H, W);
    # in_channels of the Linear layers = C*H*W after the flatten.
    B, C, H, W = 2, 4, 16, 16
    in_channels = C * H * W          # 1024
    out_channels = 32

    key = jax.random.PRNGKey(0)
    k_feats, k_mu, k_lv = jax.random.split(key, 3)

    feats = jax.random.normal(k_feats, (B, C, H, W), dtype=jnp.float32)

    # Deterministic nn.Linear-style init: U(-1/sqrt(in), 1/sqrt(in)), weight (out, in).
    bound = 1.0 / jnp.sqrt(jnp.float32(in_channels))
    w_mu = jax.random.uniform(k_mu, (out_channels, in_channels),
                              minval=-bound, maxval=bound, dtype=jnp.float32)
    w_lv = jax.random.uniform(k_lv, (out_channels, in_channels),
                              minval=-bound, maxval=bound, dtype=jnp.float32)

    # --- one-time init (OUTSIDE the hot path): fuse + pad the weights ------
    # On v6e/v7x, pass dtype=jnp.bfloat16 here to halve the streamed bytes.
    w_fused, o = prepare_fused_weight(w_mu, w_lv)
    w_fused = jax.block_until_ready(w_fused)

    # --- hot path: flatten like feats.view(B, -1) and run the kernel -------
    x = feats.reshape(B, -1)
    mu, logvar = linear_feature_compressor(x, w_fused, o)
    mu = jax.block_until_ready(mu)
    logvar = jax.block_until_ready(logvar)

    # Reference check (plain JAX) to verify semantics.
    mu_ref = x @ w_mu.T
    lv_ref = x @ w_lv.T
    assert mu.shape == (B, out_channels) and logvar.shape == (B, out_channels)
    assert jnp.allclose(mu, mu_ref, atol=1e-5, rtol=1e-5)
    assert jnp.allclose(logvar, lv_ref, atol=1e-5, rtol=1e-5)

    print("KERNEL_OK")
</pallas_src>

<mosaic_0001>
module attributes {stable_mosaic.version = 11 : i64} {
  func.func @_compressor_kernel(%arg0: i32, %arg1: i32, %arg2: memref<8x1024xf32, #tpu.memory_space<vmem>>, %arg3: memref<128x1024xf32, #tpu.memory_space<vmem>>, %arg4: memref<8x128xf32, #tpu.memory_space<vmem>>) attributes {dimension_semantics = [#tpu.dimension_semantics<parallel>, #tpu.dimension_semantics<arbitrary>], iteration_bounds = array<i64: 1, 1>, scalar_prefetch = 0 : i64, scratch_operands = 0 : i64, tpu.core_type = #tpu.core_type<tc>, window_params = [{pipeline_mode = #tpu.pipeline_mode<synchronous>, transform_indices = @transform_0, window_bounds = array<i64: 8, 1024>}, {pipeline_mode = #tpu.pipeline_mode<synchronous>, transform_indices = @transform_1, window_bounds = array<i64: 128, 1024>}, {transform_indices = @transform_2, window_bounds = array<i64: 8, 128>}]} {
    %c0_i32 = arith.constant 0 : i32
    %0 = arith.cmpi eq, %arg1, %c0_i32 : i32
    %1 = arith.extui %0 : i1 to i32
    %c0_i32_0 = arith.constant 0 : i32
    %2 = arith.cmpi ne, %1, %c0_i32_0 : i32
    scf.if %2 {
      %cst_8 = arith.constant 0.000000e+00 : f32
      %9 = vector.broadcast %cst_8 : f32 to vector<8x128xf32>
      %c0_9 = arith.constant 0 : index
      %c0_10 = arith.constant 0 : index
      %10 = vector.load %arg4[%c0_9, %c0_10] : memref<8x128xf32, #tpu.memory_space<vmem>>, vector<8x128xf32>
      tpu.vector_store %arg4[%c0_9, %c0_10], %9 {strides = array<i32>} : memref<8x128xf32, #tpu.memory_space<vmem>>, vector<8x128xf32>,
    } else {
    }
    %c0 = arith.constant 0 : index
    %c0_1 = arith.constant 0 : index
    %3 = vector.load %arg4[%c0, %c0_1] : memref<8x128xf32, #tpu.memory_space<vmem>>, vector<8x128xf32>
    %c0_2 = arith.constant 0 : index
    %c0_3 = arith.constant 0 : index
    %4 = vector.load %arg2[%c0_2, %c0_3] : memref<8x1024xf32, #tpu.memory_space<vmem>>, vector<8x1024xf32>
    %c0_4 = arith.constant 0 : index
    %c0_5 = arith.constant 0 : index
    %5 = vector.load %arg3[%c0_4, %c0_5] : memref<128x1024xf32, #tpu.memory_space<vmem>>, vector<128x1024xf32>
    %cst = arith.constant dense<0.000000e+00> : vector<8x128xf32>
    %6 = tpu.matmul %4, %5, %cst {dimension_numbers = #tpu.dot_dimension_numbers<[1], [1], [0], [0], [0, 0, 1, 0], [], []>} : vector<8x1024xf32>, vector<128x1024xf32>, vector<8x128xf32> -> vector<8x128xf32>
    %7 = arith.addf %3, %6 : vector<8x128xf32>
    %c0_6 = arith.constant 0 : index
    %c0_7 = arith.constant 0 : index
    %8 = vector.load %arg4[%c0_6, %c0_7] : memref<8x128xf32, #tpu.memory_space<vmem>>, vector<8x128xf32>
    tpu.vector_store %arg4[%c0_6, %c0_7], %7 {strides = array<i32>} : memref<8x128xf32, #tpu.memory_space<vmem>>, vector<8x128xf32>,
    return
  }
  func.func @transform_0(%arg0: i32, %arg1: i32) -> (i32, i32) {
    %c0_i32 = arith.constant 0 : i32
    %c0_i32_0 = arith.constant 0 : i32
    return %c0_i32, %arg1 : i32, i32
  }
  func.func @transform_1(%arg0: i32, %arg1: i32) -> (i32, i32) {
    %c0_i32 = arith.constant 0 : i32
    return %arg0, %arg1 : i32, i32
  }
  func.func @transform_2(%arg0: i32, %arg1: i32) -> (i32, i32) {
    %c0_i32 = arith.constant 0 : i32
    %c0_i32_0 = arith.constant 0 : i32
    return %c0_i32, %arg0 : i32, i32
  }
}

module attributes {stable_mosaic.version = 11 : i64} {
  func.func @_compressor_kernel(%arg0: i32, %arg1: i32, %arg2: memref<8x1024xf32, #tpu.memory_space<vmem>>, %arg3: memref<128x1024xf32, #tpu.memory_space<vmem>>, %arg4: memref<8x128xf32, #tpu.memory_space<vmem>>) attributes {dimension_semantics = [#tpu.dimension_semantics<parallel>, #tpu.dimension_semantics<arbitrary>], iteration_bounds = array<i64: 1, 1>, scalar_prefetch = 0 : i64, scratch_operands = 0 : i64, tpu.core_type = #tpu.core_type<tc>, window_params = [{transform_indices = @transform_0, window_bounds = array<i64: 8, 1024>}, {transform_indices = @transform_1, window_bounds = array<i64: 128, 1024>}, {transform_indices = @transform_2, window_bounds = array<i64: 8, 128>}]} {
    %c0_i32 = arith.constant 0 : i32
    %0 = arith.cmpi eq, %arg1, %c0_i32 : i32
    %1 = arith.extui %0 : i1 to i32
    %c0_i32_0 = arith.constant 0 : i32
    %2 = arith.cmpi ne, %1, %c0_i32_0 : i32
    scf.if %2 {
      %cst_8 = arith.constant 0.000000e+00 : f32
      %9 = vector.broadcast %cst_8 : f32 to vector<8x128xf32>
      %c0_9 = arith.constant 0 : index
      %c0_10 = arith.constant 0 : index
      %10 = vector.load %arg4[%c0_9, %c0_10] : memref<8x128xf32, #tpu.memory_space<vmem>>, vector<8x128xf32>
      tpu.vector_store %arg4[%c0_9, %c0_10], %9 {strides = array<i32>} : memref<8x128xf32, #tpu.memory_space<vmem>>, vector<8x128xf32>,
    } else {
    }
    %c0 = arith.constant 0 : index
    %c0_1 = arith.constant 0 : index
    %3 = vector.load %arg4[%c0, %c0_1] : memref<8x128xf32, #tpu.memory_space<vmem>>, vector<8x128xf32>
    %c0_2 = arith.constant 0 : index
    %c0_3 = arith.constant 0 : index
    %4 = vector.load %arg2[%c0_2, %c0_3] : memref<8x1024xf32, #tpu.memory_space<vmem>>, vector<8x1024xf32>
    %c0_4 = arith.constant 0 : index
    %c0_5 = arith.constant 0 : index
    %5 = vector.load %arg3[%c0_4, %c0_5] : memref<128x1024xf32, #tpu.memory_space<vmem>>, vector<128x1024xf32>
    %cst = arith.constant dense<0.000000e+00> : vector<8x128xf32>
    %6 = tpu.matmul %4, %5, %cst {dimension_numbers = #tpu.dot_dimension_numbers<[1], [1], [0], [0], [0, 0, 1, 0], [], []>} : vector<8x1024xf32>, vector<128x1024xf32>, vector<8x128xf32> -> vector<8x128xf32>
    %7 = arith.addf %3, %6 : vector<8x128xf32>
    %c0_6 = arith.constant 0 : index
    %c0_7 = arith.constant 0 : index
    %8 = vector.load %arg4[%c0_6, %c0_7] : memref<8x128xf32, #tpu.memory_space<vmem>>, vector<8x128xf32>
    tpu.vector_store %arg4[%c0_6, %c0_7], %7 {strides = array<i32>} : memref<8x128xf32, #tpu.memory_space<vmem>>, vector<8x128xf32>,
    return
  }
  func.func @transform_0(%arg0: i32, %arg1: i32) -> (i32, i32) {
    %c0_i32 = arith.constant 0 : i32
    %c0_i32_0 = arith.constant 0 : i32
    return %c0_i32, %arg1 : i32, i32
  }
  func.func @transform_1(%arg0: i32, %arg1: i32) -> (i32, i32) {
    %c0_i32 = arith.constant 0 : i32
    return %arg0, %arg1 : i32, i32
  }
  func.func @transform_2(%arg0: i32, %arg1: i32) -> (i32, i32) {
    %c0_i32 = arith.constant 0 : i32
    %c0_i32_0 = arith.constant 0 : i32
    return %c0_i32, %arg0 : i32, i32
  }
}

</mosaic_0001>

<bundles_post_ra>
// kernel: tpu_custom_call.1
= control target key start
LH: loop header
LB: loop body
LE: loop exit
PB: predicated region body
PF: predicated region fallthrough
CT: control target
= control target key end

     0   :  { %7 = vsyncpa [#allocation3], 0  ;;  %s579_s0 = inlined_call_operand.hbm [shape: f32[8,1024], index: 0, kind: input, shape index: {}]   ;;  %s580_s1 = inlined_call_operand.hbm [shape: f32[128,1024], index: 1, kind: input, shape index: {}]   ;;  %s581_s2 = inlined_call_operand.hbm [shape: f32[8,128], index: 2, kind: output, shape index: {}]  }
   0x1   :  { %8 = vsyncpa [#allocation6], 0 }
   0x2   :  { %9 = vsyncpa [#allocation4], 0  ;;  %s550_s9 = smov [#allocation2]   ;;  %s551_s11 = smov [#allocation5]  }
   0x3   :  { %s16_s10 = sshll.u32 %s550_s9, 4  ;;  %s25_s12 = sshll.u32 %s551_s11, 4  ;;  %s17_s10 = int_to_ptr.vmem [resolvable:$true] %s16_s10  ;;  %s26_s12 = int_to_ptr.vmem [resolvable:$true] %s25_s12 }
   0x4   :  { %s492_s13 = scalar_lea.vmem %s17_s10, 1024  ;;  %p497_p1 = scmp.lt.s32.totalorder %s17_s10, %s17_s10 }
   0x5   :  { %p493_p0 = scmp.ne.s32.totalorder %s17_s10, %s492_s13  ;;  %p498_p2 = scmp.lt.s32.totalorder %s492_s13, %s492_s13 }
   0x7   :  { %p499_p3 = por %p498_p2, %p497_p1 }
   0x9   :  { %p500_p4 = pnand %p499_p3, %p493_p0 }
   0xb   :  { %503 = shalt.err (!%p500_p4)
}
   0xc   :  { %19 = dma.hbm_to_vmem [thread:$0]  %s579_s0, 1024, %s17_s10, [#allocation3]  }
   0xd   :  { %s512_s16 = scalar_lea.vmem %s26_s12, 16384  ;;  %p517_p6 = scmp.lt.s32.totalorder %s26_s12, %s26_s12 }
   0xe   :  { %p513_p5 = scmp.ne.s32.totalorder %s26_s12, %s512_s16  ;;  %p518_p7 = scmp.lt.s32.totalorder %s512_s16, %s512_s16 }
  0x10   :  { %p519_p8 = por %p518_p7, %p517_p6 }
  0x12   :  { %p520_p9 = pnand %p519_p8, %p513_p5 }
  0x14   :  { %523 = shalt.err (!%p520_p9)
}
  0x15   :  { %s552_s17 = smov 1024   ;;  %s553_s18 = smov 64  }
  0x16   :  { %31 = dma.hbm_to_vmem [thread:$0]  %s580_s1, 16384, %s26_s12, [#allocation6], %s552_s17, %s552_s17, %s553_s18  }
  0x17   :  { %544 = dma.done.wait [#allocation3], 1024  }
  0x18   :  { %545 = vsyncadd [#allocation3], 4294966272 }
  0x19   :  { %546 = dma.done.wait [#allocation6], 16384  }
  0x1a   :  { %547 = vsyncadd [#allocation6], 4294950912  ;;  %v173_v0 = vld [vmem:[#allocation5 + $0x3c8] sm:$0xff]  ;;  %v175_v1 = vld [vmem:[#allocation5 + $0x3d8] sm:$0xff]  ;;  %s554_s0 = smov [#allocation7]  }
  0x1b   :  { %v172_v2 = vld [vmem:[#allocation5 + $0x3c0] sm:$0xff]  ;;  %180 = vmatprep.subr.mxu0 %v173_v0  ;;  %250 = vmatprep.subr.mxu1 %v175_v1  ;;  %v174_v3 = vld [vmem:[#allocation5 + $0x3d0] sm:$0xff]  ;;  %v165_v4 = vld [vmem:[#allocation5 + $0x388] sm:$0xff]  ;;  %s468_s1 = sshll.u32 %s554_s0, 4  ;;  %s469_s1 = int_to_ptr.vmem [resolvable:$true] %s468_s1 }
  0x1c   :  { %v167_v5 = vld [vmem:[#allocation5 + $0x398] sm:$0xff]  ;;  %181 = vmatpush1.xpose.msra.mxu0 %v172_v2  ;;  %251 = vmatpush1.xpose.msra.mxu1 %v174_v3  ;;  %v164_v6 = vld [vmem:[#allocation5 + $0x380] sm:$0xff]  ;;  %v166_v7 = vld [vmem:[#allocation5 + $0x390] sm:$0xff]  ;;  %s524_s21 = scalar_lea.vmem %s469_s1, 128  ;;  %p529_p11 = scmp.lt.s32.totalorder %s469_s1, %s469_s1 }
  0x1d   :  { %182 = vmatprep.subr.mxu0 %v165_v4  ;;  %252 = vmatprep.subr.mxu1 %v167_v5  ;;  %v157_v8 = vld [vmem:[#allocation5 + $0x348] sm:$0xff]  ;;  %v159_v9 = vld [vmem:[#allocation5 + $0x358] sm:$0xff]  ;;  %v156_v10 = vld [vmem:[#allocation5 + $0x340] sm:$0xff]  ;;  %p525_p10 = scmp.ne.s32.totalorder %s469_s1, %s524_s21  ;;  %p530_p12 = scmp.lt.s32.totalorder %s524_s21, %s524_s21 }
  0x1e   :  { %v158_v11 = vld [vmem:[#allocation5 + $0x350] sm:$0xff]  ;;  %v149_v12 = vld [vmem:[#allocation5 + $0x308] sm:$0xff]  ;;  %v151_v13 = vld [vmem:[#allocation5 + $0x318] sm:$0xff] }
  0x1f   :  { %v148_v14 = vld [vmem:[#allocation5 + $0x300] sm:$0xff]  ;;  %v150_v15 = vld [vmem:[#allocation5 + $0x310] sm:$0xff]  ;;  %v141_v16 = vld [vmem:[#allocation5 + $0x2c8] sm:$0xff]  ;;  %p531_p13 = por %p530_p12, %p529_p11 }
  0x20   :  { %183 = vmatpush1.xpose.msra.mxu0 %v164_v6  ;;  %253 = vmatpush1.xpose.msra.mxu1 %v166_v7  ;;  %v143_v17 = vld [vmem:[#allocation5 + $0x2d8] sm:$0xff]  ;;  %v140_v18 = vld [vmem:[#allocation5 + $0x2c0] sm:$0xff]  ;;  %v142_v19 = vld [vmem:[#allocation5 + $0x2d0] sm:$0xff] }
  0x21   :  { %184 = vmatprep.subr.mxu0 %v157_v8  ;;  %254 = vmatprep.subr.mxu1 %v159_v9  ;;  %v133_v20 = vld [vmem:[#allocation5 + $0x288] sm:$0xff]  ;;  %v135_v21 = vld [vmem:[#allocation5 + $0x298] sm:$0xff]  ;;  %v132_v22 = vld [vmem:[#allocation5 + $0x280] sm:$0xff]  ;;  %p532_p0 = pnand %p531_p13, %p525_p10 }
  0x22   :  { %v134_v23 = vld [vmem:[#allocation5 + $0x290] sm:$0xff]  ;;  %v125_v24 = vld [vmem:[#allocation5 + $0x248] sm:$0xff]  ;;  %v127_v25 = vld [vmem:[#allocation5 + $0x258] sm:$0xff] }
  0x23   :  { %v45_v26 = vld [vmem:[#allocation2 + $0x8] sm:$0xff]  ;;  %v47_v27 = vld [vmem:[#allocation2 + $0x18] sm:$0xff]  ;;  %v124_v28 = vld [vmem:[#allocation5 + $0x240] sm:$0xff] }
  0x24   :  { %185 = vmatpush1.xpose.msra.mxu0 %v156_v10  ;;  %255 = vmatpush1.xpose.msra.mxu1 %v158_v11  ;;  %v126_v29 = vld [vmem:[#allocation5 + $0x250] sm:$0xff]  ;;  %v117_v30 = vld [vmem:[#allocation5 + $0x208] sm:$0xff]  ;;  %v119_v31 = vld [vmem:[#allocation5 + $0x218] sm:$0xff] }
  0x25   :  { %186 = vmatprep.subr.mxu0 %v149_v12  ;;  %256 = vmatprep.subr.mxu1 %v151_v13  ;;  %v116_v32 = vld [vmem:[#allocation5 + $0x200] sm:$0xff]  ;;  %v118_v33 = vld [vmem:[#allocation5 + $0x210] sm:$0xff]  ;;  %v109_v34 = vld [vmem:[#allocation5 + $0x1c8] sm:$0xff] }
  0x26   :  { %244 = vmatprep.mubr.f32.mxu0 %v45_v26  ;;  %314 = vmatprep.mubr.f32.mxu1 %v47_v27  ;;  %v111_v35 = vld [vmem:[#allocation5 + $0x1d8] sm:$0xff]  ;;  %v108_v36 = vld [vmem:[#allocation5 + $0x1c0] sm:$0xff]  ;;  %v110_v37 = vld [vmem:[#allocation5 + $0x1d0] sm:$0xff] }
  0x27   :  { %v101_v38 = vld [vmem:[#allocation5 + $0x188] sm:$0xff]  ;;  %v103_v39 = vld [vmem:[#allocation5 + $0x198] sm:$0xff]  ;;  %v100_v40 = vld [vmem:[#allocation5 + $0x180] sm:$0xff] }
  0x28   :  { %187 = vmatpush1.xpose.msra.mxu0 %v148_v14  ;;  %257 = vmatpush1.xpose.msra.mxu1 %v150_v15  ;;  %v102_v41 = vld [vmem:[#allocation5 + $0x190] sm:$0xff]  ;;  %v93_v42 = vld [vmem:[#allocation5 + $0x148] sm:$0xff]  ;;  %v95_v43 = vld [vmem:[#allocation5 + $0x158] sm:$0xff] }
  0x29   :  { %188 = vmatprep.subr.mxu0 %v141_v16  ;;  %258 = vmatprep.subr.mxu1 %v143_v17  ;;  %v92_v44 = vld [vmem:[#allocation5 + $0x140] sm:$0xff]  ;;  %v94_v45 = vld [vmem:[#allocation5 + $0x150] sm:$0xff]  ;;  %v85_v46 = vld [vmem:[#allocation5 + $0x108] sm:$0xff] }
  0x2a   :  { %v87_v47 = vld [vmem:[#allocation5 + $0x118] sm:$0xff]  ;;  %v84_v48 = vld [vmem:[#allocation5 + $0x100] sm:$0xff]  ;;  %v86_v49 = vld [vmem:[#allocation5 + $0x110] sm:$0xff] }
  0x2b   :  { %v77_v50 = vld [vmem:[#allocation5 + $0xc8] sm:$0xff]  ;;  %v79_v51 = vld [vmem:[#allocation5 + $0xd8] sm:$0xff]  ;;  %v76_v52 = vld [vmem:[#allocation5 + $0xc0] sm:$0xff] }
  0x2c   :  { %189 = vmatpush1.xpose.msra.mxu0 %v140_v18  ;;  %259 = vmatpush1.xpose.msra.mxu1 %v142_v19  ;;  %v78_v53 = vld [vmem:[#allocation5 + $0xd0] sm:$0xff]  ;;  %v69_v54 = vld [vmem:[#allocation5 + $0x88] sm:$0xff]  ;;  %v71_v55 = vld [vmem:[#allocation5 + $0x98] sm:$0xff] }
  0x2d   :  { %190 = vmatprep.subr.mxu0 %v133_v20  ;;  %260 = vmatprep.subr.mxu1 %v135_v21  ;;  %v68_v56 = vld [vmem:[#allocation5 + $0x80] sm:$0xff]  ;;  %v70_v57 = vld [vmem:[#allocation5 + $0x90] sm:$0xff]  ;;  %v61_v58 = vld [vmem:[#allocation5 + $0x48] sm:$0xff] }
  0x2e   :  { %v63_v59 = vld [vmem:[#allocation5 + $0x58] sm:$0xff]  ;;  %v60_v60 = vld [vmem:[#allocation5 + $0x40] sm:$0xff]  ;;  %v62_v61 = vld [vmem:[#allocation5 + $0x50] sm:$0xff] }
  0x2f   :  { %v53_v62 = vld [vmem:[#allocation5 + $0x8] sm:$0xff]  ;;  %v55_v63 = vld [vmem:[#allocation5 + $0x18] sm:$0xff]  ;;  %v52_v0 = vld [vmem:[#allocation5] sm:$0xff] }
  0x30   :  { %191 = vmatpush1.xpose.msra.mxu0 %v132_v22  ;;  %261 = vmatpush1.xpose.msra.mxu1 %v134_v23  ;;  %v54_v1 = vld [vmem:[#allocation5 + $0x10] sm:$0xff]  ;;  %v177_v2 = vld [vmem:[#allocation5 + $0x3e8] sm:$0xff]  ;;  %v179_v3 = vld [vmem:[#allocation5 + $0x3f8] sm:$0xff] }
  0x31   :  { %192 = vmatprep.subr.mxu0 %v125_v24  ;;  %262 = vmatprep.subr.mxu1 %v127_v25  ;;  %v44_v4 = vld [vmem:[#allocation2] sm:$0xff]  ;;  %v46_v5 = vld [vmem:[#allocation2 + $0x10] sm:$0xff]  ;;  %v169_v8 = vld [vmem:[#allocation5 + $0x3a8] sm:$0xff] }
  0x32   :  { %v176_v6 = vld [vmem:[#allocation5 + $0x3e0] sm:$0xff]  ;;  %v178_v7 = vld [vmem:[#allocation5 + $0x3f0] sm:$0xff]  ;;  %v171_v9 = vld [vmem:[#allocation5 + $0x3b8] sm:$0xff] }
  0x33   :  { %v49_v10 = vld [vmem:[#allocation2 + $0x28] sm:$0xff]  ;;  %v51_v11 = vld [vmem:[#allocation2 + $0x38] sm:$0xff]  ;;  %v168_v12 = vld [vmem:[#allocation5 + $0x3a0] sm:$0xff] }
  0x34   :  { %193 = vmatpush1.xpose.msra.mxu0 %v124_v28  ;;  %263 = vmatpush1.xpose.msra.mxu1 %v126_v29  ;;  %v170_v13 = vld [vmem:[#allocation5 + $0x3b0] sm:$0xff]  ;;  %v161_v14 = vld [vmem:[#allocation5 + $0x368] sm:$0xff]  ;;  %v163_v15 = vld [vmem:[#allocation5 + $0x378] sm:$0xff] }
  0x35   :  { %194 = vmatprep.subr.mxu0 %v117_v30  ;;  %264 = vmatprep.subr.mxu1 %v119_v31  ;;  %v160_v16 = vld [vmem:[#allocation5 + $0x360] sm:$0xff]  ;;  %v162_v17 = vld [vmem:[#allocation5 + $0x370] sm:$0xff]  ;;  %v153_v18 = vld [vmem:[#allocation5 + $0x328] sm:$0xff] }
  0x36   :  { %v155_v19 = vld [vmem:[#allocation5 + $0x338] sm:$0xff]  ;;  %v152_v20 = vld [vmem:[#allocation5 + $0x320] sm:$0xff]  ;;  %v154_v21 = vld [vmem:[#allocation5 + $0x330] sm:$0xff] }
  0x37   :  { %v145_v22 = vld [vmem:[#allocation5 + $0x2e8] sm:$0xff]  ;;  %v147_v23 = vld [vmem:[#allocation5 + $0x2f8] sm:$0xff]  ;;  %v144_v24 = vld [vmem:[#allocation5 + $0x2e0] sm:$0xff] }
  0x38   :  { %195 = vmatpush1.xpose.msra.mxu0 %v116_v32  ;;  %265 = vmatpush1.xpose.msra.mxu1 %v118_v33  ;;  %v146_v25 = vld [vmem:[#allocation5 + $0x2f0] sm:$0xff]  ;;  %v137_v26 = vld [vmem:[#allocation5 + $0x2a8] sm:$0xff]  ;;  %v139_v27 = vld [vmem:[#allocation5 + $0x2b8] sm:$0xff] }
  0x39   :  { %196 = vmatprep.subr.mxu0 %v109_v34  ;;  %266 = vmatprep.subr.mxu1 %v111_v35  ;;  %v136_v28 = vld [vmem:[#allocation5 + $0x2a0] sm:$0xff]  ;;  %v138_v29 = vld [vmem:[#allocation5 + $0x2b0] sm:$0xff]  ;;  %v129_v30 = vld [vmem:[#allocation5 + $0x268] sm:$0xff] }
  0x3a   :  { %v131_v31 = vld [vmem:[#allocation5 + $0x278] sm:$0xff]  ;;  %v128_v32 = vld [vmem:[#allocation5 + $0x260] sm:$0xff]  ;;  %v130_v33 = vld [vmem:[#allocation5 + $0x270] sm:$0xff] }
  0x3b   :  { %v121_v34 = vld [vmem:[#allocation5 + $0x228] sm:$0xff]  ;;  %v123_v35 = vld [vmem:[#allocation5 + $0x238] sm:$0xff] }
  0x3c   :  { %197 = vmatpush1.xpose.msra.mxu0 %v108_v36  ;;  %267 = vmatpush1.xpose.msra.mxu1 %v110_v37  ;;  %v120_v36 = vld [vmem:[#allocation5 + $0x220] sm:$0xff]  ;;  %v122_v37 = vld [vmem:[#allocation5 + $0x230] sm:$0xff] }
  0x3d   :  { %198 = vmatprep.subr.mxu0 %v101_v38  ;;  %268 = vmatprep.subr.mxu1 %v103_v39  ;;  %v113_v38 = vld [vmem:[#allocation5 + $0x1e8] sm:$0xff]  ;;  %v115_v39 = vld [vmem:[#allocation5 + $0x1f8] sm:$0xff] }
  0x40   :  { %199 = vmatpush1.xpose.msra.mxu0 %v100_v40  ;;  %269 = vmatpush1.xpose.msra.mxu1 %v102_v41  ;;  %v112_v40 = vld [vmem:[#allocation5 + $0x1e0] sm:$0xff]  ;;  %v114_v41 = vld [vmem:[#allocation5 + $0x1f0] sm:$0xff] }
  0x41   :  { %200 = vmatprep.subr.mxu0 %v93_v42  ;;  %270 = vmatprep.subr.mxu1 %v95_v43  ;;  %v105_v42 = vld [vmem:[#allocation5 + $0x1a8] sm:$0xff]  ;;  %v107_v43 = vld [vmem:[#allocation5 + $0x1b8] sm:$0xff] }
  0x44   :  { %201 = vmatpush1.xpose.msra.mxu0 %v92_v44  ;;  %271 = vmatpush1.xpose.msra.mxu1 %v94_v45  ;;  %v104_v44 = vld [vmem:[#allocation5 + $0x1a0] sm:$0xff]  ;;  %v106_v45 = vld [vmem:[#allocation5 + $0x1b0] sm:$0xff] }
  0x45   :  { %202 = vmatprep.subr.mxu0 %v85_v46  ;;  %272 = vmatprep.subr.mxu1 %v87_v47  ;;  %v97_v46 = vld [vmem:[#allocation5 + $0x168] sm:$0xff]  ;;  %v99_v47 = vld [vmem:[#allocation5 + $0x178] sm:$0xff] }
  0x48   :  { %203 = vmatpush1.xpose.msra.mxu0 %v84_v48  ;;  %273 = vmatpush1.xpose.msra.mxu1 %v86_v49  ;;  %v96_v48 = vld [vmem:[#allocation5 + $0x160] sm:$0xff]  ;;  %v98_v49 = vld [vmem:[#allocation5 + $0x170] sm:$0xff] }
  0x49   :  { %204 = vmatprep.subr.mxu0 %v77_v50  ;;  %274 = vmatprep.subr.mxu1 %v79_v51  ;;  %v89_v50 = vld [vmem:[#allocation5 + $0x128] sm:$0xff]  ;;  %v91_v51 = vld [vmem:[#allocation5 + $0x138] sm:$0xff] }
  0x4c   :  { %205 = vmatpush1.xpose.msra.mxu0 %v76_v52  ;;  %275 = vmatpush1.xpose.msra.mxu1 %v78_v53  ;;  %v88_v52 = vld [vmem:[#allocation5 + $0x120] sm:$0xff]  ;;  %v90_v53 = vld [vmem:[#allocation5 + $0x130] sm:$0xff] }
  0x4d   :  { %206 = vmatprep.subr.mxu0 %v69_v54  ;;  %276 = vmatprep.subr.mxu1 %v71_v55  ;;  %v81_v54 = vld [vmem:[#allocation5 + $0xe8] sm:$0xff]  ;;  %v83_v55 = vld [vmem:[#allocation5 + $0xf8] sm:$0xff] }
  0x50   :  { %207 = vmatpush1.xpose.msra.mxu0 %v68_v56  ;;  %277 = vmatpush1.xpose.msra.mxu1 %v70_v57  ;;  %v80_v56 = vld [vmem:[#allocation5 + $0xe0] sm:$0xff]  ;;  %v82_v57 = vld [vmem:[#allocation5 + $0xf0] sm:$0xff] }
  0x51   :  { %208 = vmatprep.subr.mxu0 %v61_v58  ;;  %278 = vmatprep.subr.mxu1 %v63_v59  ;;  %v73_v58 = vld [vmem:[#allocation5 + $0xa8] sm:$0xff]  ;;  %v75_v59 = vld [vmem:[#allocation5 + $0xb8] sm:$0xff] }
  0x54   :  { %209 = vmatpush1.xpose.msra.mxu0 %v60_v60  ;;  %279 = vmatpush1.xpose.msra.mxu1 %v62_v61  ;;  %v72_v60 = vld [vmem:[#allocation5 + $0xa0] sm:$0xff]  ;;  %v74_v61 = vld [vmem:[#allocation5 + $0xb0] sm:$0xff] }
  0x55   :  { %210 = vmatprep.subr.mxu0 %v53_v62  ;;  %280 = vmatprep.subr.mxu1 %v55_v63  ;;  %v65_v62 = vld [vmem:[#allocation5 + $0x68] sm:$0xff]  ;;  %v67_v63 = vld [vmem:[#allocation5 + $0x78] sm:$0xff] }
  0x58   :  { %211 = vmatpush1.xpose.msra.mxu0 %v52_v0  ;;  %281 = vmatpush1.xpose.msra.mxu1 %v54_v1  ;;  %v64_v0 = vld [vmem:[#allocation5 + $0x60] sm:$0xff]  ;;  %v66_v1 = vld [vmem:[#allocation5 + $0x70] sm:$0xff] }
  0x59   :  { %320 = vmatprep.subr.mxu0 %v177_v2  ;;  %390 = vmatprep.subr.mxu1 %v179_v3  ;;  %v57_v2 = vld [vmem:[#allocation5 + $0x28] sm:$0xff]  ;;  %v59_v3 = vld [vmem:[#allocation5 + $0x38] sm:$0xff] }
  0x5b   :  { %245 = vmatmul.mubr.f32.vlgmr.msra.gmra.mxu0 %v44_v4  ;;  %315 = vmatmul.mubr.f32.vlgmr.msra.gmra.mxu1 %v46_v5  ;;  %v56_v4 = vld [vmem:[#allocation5 + $0x20] sm:$0xff]  ;;  %v58_v5 = vld [vmem:[#allocation5 + $0x30] sm:$0xff] }
  0x5c   :  { %321 = vmatpush1.xpose.msra.mxu0 %v176_v6  ;;  %391 = vmatpush1.xpose.msra.mxu1 %v178_v7  ;;  %v48_v6 = vld [vmem:[#allocation2 + $0x20] sm:$0xff]  ;;  %v50_v7 = vld [vmem:[#allocation2 + $0x30] sm:$0xff] }
  0x5d   :  { %322 = vmatprep.subr.mxu0 %v169_v8  ;;  %392 = vmatprep.subr.mxu1 %v171_v9 }
  0x5e   :  { %384 = vmatprep.mubr.f32.mxu0 %v49_v10  ;;  %454 = vmatprep.mubr.f32.mxu1 %v51_v11 }
  0x60   :  { %323 = vmatpush1.xpose.msra.mxu0 %v168_v12  ;;  %393 = vmatpush1.xpose.msra.mxu1 %v170_v13 }
  0x61   :  { %324 = vmatprep.subr.mxu0 %v161_v14  ;;  %394 = vmatprep.subr.mxu1 %v163_v15 }
  0x64   :  { %325 = vmatpush1.xpose.msra.mxu0 %v160_v16  ;;  %395 = vmatpush1.xpose.msra.mxu1 %v162_v17 }
  0x65   :  { %326 = vmatprep.subr.mxu0 %v153_v18  ;;  %396 = vmatprep.subr.mxu1 %v155_v19 }
  0x68   :  { %327 = vmatpush1.xpose.msra.mxu0 %v152_v20  ;;  %397 = vmatpush1.xpose.msra.mxu1 %v154_v21 }
  0x69   :  { %328 = vmatprep.subr.mxu0 %v145_v22  ;;  %398 = vmatprep.subr.mxu1 %v147_v23 }
  0x6c   :  { %329 = vmatpush1.xpose.msra.mxu0 %v144_v24  ;;  %399 = vmatpush1.xpose.msra.mxu1 %v146_v25 }
  0x6d   :  { %330 = vmatprep.subr.mxu0 %v137_v26  ;;  %400 = vmatprep.subr.mxu1 %v139_v27 }
  0x70   :  { %331 = vmatpush1.xpose.msra.mxu0 %v136_v28  ;;  %401 = vmatpush1.xpose.msra.mxu1 %v138_v29 }
  0x71   :  { %332 = vmatprep.subr.mxu0 %v129_v30  ;;  %402 = vmatprep.subr.mxu1 %v131_v31 }
  0x74   :  { %333 = vmatpush1.xpose.msra.mxu0 %v128_v32  ;;  %403 = vmatpush1.xpose.msra.mxu1 %v130_v33 }
  0x75   :  { %334 = vmatprep.subr.mxu0 %v121_v34  ;;  %404 = vmatprep.subr.mxu1 %v123_v35 }
  0x78   :  { %335 = vmatpush1.xpose.msra.mxu0 %v120_v36  ;;  %405 = vmatpush1.xpose.msra.mxu1 %v122_v37 }
  0x79   :  { %336 = vmatprep.subr.mxu0 %v113_v38  ;;  %406 = vmatprep.subr.mxu1 %v115_v39 }
  0x7c   :  { %337 = vmatpush1.xpose.msra.mxu0 %v112_v40  ;;  %407 = vmatpush1.xpose.msra.mxu1 %v114_v41 }
  0x7d   :  { %338 = vmatprep.subr.mxu0 %v105_v42  ;;  %408 = vmatprep.subr.mxu1 %v107_v43 }
  0x80   :  { %339 = vmatpush1.xpose.msra.mxu0 %v104_v44  ;;  %409 = vmatpush1.xpose.msra.mxu1 %v106_v45 }
  0x81   :  { %340 = vmatprep.subr.mxu0 %v97_v46  ;;  %410 = vmatprep.subr.mxu1 %v99_v47 }
  0x84   :  { %341 = vmatpush1.xpose.msra.mxu0 %v96_v48  ;;  %411 = vmatpush1.xpose.msra.mxu1 %v98_v49 }
  0x85   :  { %342 = vmatprep.subr.mxu0 %v89_v50  ;;  %412 = vmatprep.subr.mxu1 %v91_v51 }
  0x88   :  { %343 = vmatpush1.xpose.msra.mxu0 %v88_v52  ;;  %413 = vmatpush1.xpose.msra.mxu1 %v90_v53 }
  0x89   :  { %344 = vmatprep.subr.mxu0 %v81_v54  ;;  %414 = vmatprep.subr.mxu1 %v83_v55 }
  0x8c   :  { %345 = vmatpush1.xpose.msra.mxu0 %v80_v56  ;;  %415 = vmatpush1.xpose.msra.mxu1 %v82_v57 }
  0x8d   :  { %346 = vmatprep.subr.mxu0 %v73_v58  ;;  %416 = vmatprep.subr.mxu1 %v75_v59 }
  0x90   :  { %347 = vmatpush1.xpose.msra.mxu0 %v72_v60  ;;  %417 = vmatpush1.xpose.msra.mxu1 %v74_v61 }
  0x91   :  { %348 = vmatprep.subr.mxu0 %v65_v62  ;;  %418 = vmatprep.subr.mxu1 %v67_v63 }
  0x94   :  { %349 = vmatpush1.xpose.msra.mxu0 %v64_v0  ;;  %419 = vmatpush1.xpose.msra.mxu1 %v66_v1 }
  0x95   :  { %350 = vmatprep.subr.mxu0 %v57_v2  ;;  %420 = vmatprep.subr.mxu1 %v59_v3 }
  0x98   :  { %351 = vmatpush1.xpose.msra.mxu0 %v56_v4  ;;  %421 = vmatpush1.xpose.msra.mxu1 %v58_v5 }
  0x9b   :  { %385 = vmatmul.mubr.f32.vlgmr.msra.gmra.mxu0 %v48_v6  ;;  %455 = vmatmul.mubr.f32.vlgmr.msra.gmra.mxu1 %v50_v7 }
 0x11b   :  { %v246_v8 = vpop.f32.mrf.mxu0  ;;  %v316_v9 = vpop.f32.mrf.mxu1 }
 0x11c   :  { %v317_v12 = vadd.f32 %v316_v9, %v246_v8 }
 0x11d   :  { %v248_v10 = vpop.f32.mrf.mxu0  ;;  %v318_v11 = vpop.f32.mrf.mxu1 }
 0x15b   :  { %v386_v13 = vpop.f32.mrf.mxu0  ;;  %v456_v14 = vpop.f32.mrf.mxu1 }
 0x15c   :  { %v387_v15 = vadd.f32 %v386_v13, %v317_v12 }
 0x15d   :  { %v388_v16 = vpop.f32.mrf.mxu0  ;;  %v458_v17 = vpop.f32.mrf.mxu1 }
 0x15e   :  { %v457_v18 = vadd.f32 %v456_v14, %v387_v15 }
 0x160   :  { %461 = vst [vmem:[#allocation7] sm:$0xff] %v457_v18 }
 0x161   :  { %535 = shalt.err (!%p532_p0)
}
 0x162   :  { %471 = dma.vmem_to_hbm [thread:$0]  %s469_s1, 128, %s581_s2, [#allocation4]  }
 0x163   :  { %548 = dma.done.wait [#allocation4], 128  }
 0x164   :  { %549 = vsyncadd [#allocation4], 4294967168 }
 0x165   :  { %475 = vsyncpa [#allocation3], 1 }
 0x166   :  { %476 = vsyncpa [#allocation6], 1 }
 0x167   :  { %477 = vsyncpa [#allocation4], 1 }

// kernel: tpu_custom_call.1
= control target key start
LH: loop header
LB: loop body
LE: loop exit
PB: predicated region body
PF: predicated region fallthrough
CT: control target
= control target key end

     0   :  { %7 = vsyncpa [#allocation3], 0  ;;  %s579_s0 = inlined_call_operand.hbm [shape: f32[8,1024], index: 0, kind: input, shape index: {}]   ;;  %s580_s1 = inlined_call_operand.hbm [shape: f32[128,1024], index: 1, kind: input, shape index: {}]   ;;  %s581_s2 = inlined_call_operand.hbm [shape: f32[8,128], index: 2, kind: output, shape index: {}]  }
   0x1   :  { %8 = vsyncpa [#allocation6], 0 }
   0x2   :  { %9 = vsyncpa [#allocation4], 0  ;;  %s550_s9 = smov [#allocation2]   ;;  %s551_s11 = smov [#allocation5]  }
   0x3   :  { %s16_s10 = sshll.u32 %s550_s9, 4  ;;  %s25_s12 = sshll.u32 %s551_s11, 4  ;;  %s17_s10 = int_to_ptr.vmem [resolvable:$true] %s16_s10  ;;  %s26_s12 = int_to_ptr.vmem [resolvable:$true] %s25_s12 }
   0x4   :  { %s492_s13 = scalar_lea.vmem %s17_s10, 1024  ;;  %p497_p1 = scmp.lt.s32.totalorder %s17_s10, %s17_s10 }
   0x5   :  { %p493_p0 = scmp.ne.s32.totalorder %s17_s10, %s492_s13  ;;  %p498_p2 = scmp.lt.s32.totalorder %s492_s13, %s492_s13 }
   0x7   :  { %p499_p3 = por %p498_p2, %p497_p1 }
   0x9   :  { %p500_p4 = pnand %p499_p3, %p493_p0 }
   0xb   :  { %503 = shalt.err (!%p500_p4)
}
   0xc   :  { %19 = dma.hbm_to_vmem [thread:$0]  %s579_s0, 1024, %s17_s10, [#allocation3]  }
   0xd   :  { %s512_s16 = scalar_lea.vmem %s26_s12, 16384  ;;  %p517_p6 = scmp.lt.s32.totalorder %s26_s12, %s26_s12 }
   0xe   :  { %p513_p5 = scmp.ne.s32.totalorder %s26_s12, %s512_s16  ;;  %p518_p7 = scmp.lt.s32.totalorder %s512_s16, %s512_s16 }
  0x10   :  { %p519_p8 = por %p518_p7, %p517_p6 }
  0x12   :  { %p520_p9 = pnand %p519_p8, %p513_p5 }
  0x14   :  { %523 = shalt.err (!%p520_p9)
}
  0x15   :  { %s552_s17 = smov 1024   ;;  %s553_s18 = smov 64  }
  0x16   :  { %31 = dma.hbm_to_vmem [thread:$0]  %s580_s1, 16384, %s26_s12, [#allocation6], %s552_s17, %s552_s17, %s553_s18  }
  0x17   :  { %544 = dma.done.wait [#allocation3], 1024  }
  0x18   :  { %545 = vsyncadd [#allocation3], 4294966272 }
  0x19   :  { %546 = dma.done.wait [#allocation6], 16384  }
  0x1a   :  { %547 = vsyncadd [#allocation6], 4294950912  ;;  %v173_v0 = vld [vmem:[#allocation5 + $0x3c8] sm:$0xff]  ;;  %v175_v1 = vld [vmem:[#allocation5 + $0x3d8] sm:$0xff]  ;;  %s554_s0 = smov [#allocation7]  }
  0x1b   :  { %v172_v2 = vld [vmem:[#allocation5 + $0x3c0] sm:$0xff]  ;;  %180 = vmatprep.subr.mxu0 %v173_v0  ;;  %250 = vmatprep.subr.mxu1 %v175_v1  ;;  %v174_v3 = vld [vmem:[#allocation5 + $0x3d0] sm:$0xff]  ;;  %v165_v4 = vld [vmem:[#allocation5 + $0x388] sm:$0xff]  ;;  %s468_s1 = sshll.u32 %s554_s0, 4  ;;  %s469_s1 = int_to_ptr.vmem [resolvable:$true] %s468_s1 }
  0x1c   :  { %v167_v5 = vld [vmem:[#allocation5 + $0x398] sm:$0xff]  ;;  %181 = vmatpush1.xpose.msra.mxu0 %v172_v2  ;;  %251 = vmatpush1.xpose.msra.mxu1 %v174_v3  ;;  %v164_v6 = vld [vmem:[#allocation5 + $0x380] sm:$0xff]  ;;  %v166_v7 = vld [vmem:[#allocation5 + $0x390] sm:$0xff]  ;;  %s524_s21 = scalar_lea.vmem %s469_s1, 128  ;;  %p529_p11 = scmp.lt.s32.totalorder %s469_s1, %s469_s1 }
  0x1d   :  { %182 = vmatprep.subr.mxu0 %v165_v4  ;;  %252 = vmatprep.subr.mxu1 %v167_v5  ;;  %v157_v8 = vld [vmem:[#allocation5 + $0x348] sm:$0xff]  ;;  %v159_v9 = vld [vmem:[#allocation5 + $0x358] sm:$0xff]  ;;  %v156_v10 = vld [vmem:[#allocation5 + $0x340] sm:$0xff]  ;;  %p525_p10 = scmp.ne.s32.totalorder %s469_s1, %s524_s21  ;;  %p530_p12 = scmp.lt.s32.totalorder %s524_s21, %s524_s21 }
  0x1e   :  { %v158_v11 = vld [vmem:[#allocation5 + $0x350] sm:$0xff]  ;;  %v149_v12 = vld [vmem:[#allocation5 + $0x308] sm:$0xff]  ;;  %v151_v13 = vld [vmem:[#allocation5 + $0x318] sm:$0xff] }
  0x1f   :  { %v148_v14 = vld [vmem:[#allocation5 + $0x300] sm:$0xff]  ;;  %v150_v15 = vld [vmem:[#allocation5 + $0x310] sm:$0xff]  ;;  %v141_v16 = vld [vmem:[#allocation5 + $0x2c8] sm:$0xff]  ;;  %p531_p13 = por %p530_p12, %p529_p11 }
  0x20   :  { %183 = vmatpush1.xpose.msra.mxu0 %v164_v6  ;;  %253 = vmatpush1.xpose.msra.mxu1 %v166_v7  ;;  %v143_v17 = vld [vmem:[#allocation5 + $0x2d8] sm:$0xff]  ;;  %v140_v18 = vld [vmem:[#allocation5 + $0x2c0] sm:$0xff]  ;;  %v142_v19 = vld [vmem:[#allocation5 + $0x2d0] sm:$0xff] }
  0x21   :  { %184 = vmatprep.subr.mxu0 %v157_v8  ;;  %254 = vmatprep.subr.mxu1 %v159_v9  ;;  %v133_v20 = vld [vmem:[#allocation5 + $0x288] sm:$0xff]  ;;  %v135_v21 = vld [vmem:[#allocation5 + $0x298] sm:$0xff]  ;;  %v132_v22 = vld [vmem:[#allocation5 + $0x280] sm:$0xff]  ;;  %p532_p0 = pnand %p531_p13, %p525_p10 }
  0x22   :  { %v134_v23 = vld [vmem:[#allocation5 + $0x290] sm:$0xff]  ;;  %v125_v24 = vld [vmem:[#allocation5 + $0x248] sm:$0xff]  ;;  %v127_v25 = vld [vmem:[#allocation5 + $0x258] sm:$0xff] }
  0x23   :  { %v45_v26 = vld [vmem:[#allocation2 + $0x8] sm:$0xff]  ;;  %v47_v27 = vld [vmem:[#allocation2 + $0x18] sm:$0xff]  ;;  %v124_v28 = vld [vmem:[#allocation5 + $0x240] sm:$0xff] }
  0x24   :  { %185 = vmatpush1.xpose.msra.mxu0 %v156_v10  ;;  %255 = vmatpush1.xpose.msra.mxu1 %v158_v11  ;;  %v126_v29 = vld [vmem:[#allocation5 + $0x250] sm:$0xff]  ;;  %v117_v30 = vld [vmem:[#allocation5 + $0x208] sm:$0xff]  ;;  %v119_v31 = vld [vmem:[#allocation5 + $0x218] sm:$0xff] }
  0x25   :  { %186 = vmatprep.subr.mxu0 %v149_v12  ;;  %256 = vmatprep.subr.mxu1 %v151_v13  ;;  %v116_v32 = vld [vmem:[#allocation5 + $0x200] sm:$0xff]  ;;  %v118_v33 = vld [vmem:[#allocation5 + $0x210] sm:$0xff]  ;;  %v109_v34 = vld [vmem:[#allocation5 + $0x1c8] sm:$0xff] }
  0x26   :  { %244 = vmatprep.mubr.f32.mxu0 %v45_v26  ;;  %314 = vmatprep.mubr.f32.mxu1 %v47_v27  ;;  %v111_v35 = vld [vmem:[#allocation5 + $0x1d8] sm:$0xff]  ;;  %v108_v36 = vld [vmem:[#allocation5 + $0x1c0] sm:$0xff]  ;;  %v110_v37 = vld [vmem:[#allocation5 + $0x1d0] sm:$0xff] }
  0x27   :  { %v101_v38 = vld [vmem:[#allocation5 + $0x188] sm:$0xff]  ;;  %v103_v39 = vld [vmem:[#allocation5 + $0x198] sm:$0xff]  ;;  %v100_v40 = vld [vmem:[#allocation5 + $0x180] sm:$0xff] }
  0x28   :  { %187 = vmatpush1.xpose.msra.mxu0 %v148_v14  ;;  %257 = vmatpush1.xpose.msra.mxu1 %v150_v15  ;;  %v102_v41 = vld [vmem:[#allocation5 + $0x190] sm:$0xff]  ;;  %v93_v42 = vld [vmem:[#allocation5 + $0x148] sm:$0xff]  ;;  %v95_v43 = vld [vmem:[#allocation5 + $0x158] sm:$0xff] }
  0x29   :  { %188 = vmatprep.subr.mxu0 %v141_v16  ;;  %258 = vmatprep.subr.mxu1 %v143_v17  ;;  %v92_v44 = vld [vmem:[#allocation5 + $0x140] sm:$0xff]  ;;  %v94_v45 = vld [vmem:[#allocation5 + $0x150] sm:$0xff]  ;;  %v85_v46 = vld [vmem:[#allocation5 + $0x108] sm:$0xff] }
  0x2a   :  { %v87_v47 = vld [vmem:[#allocation5 + $0x118] sm:$0xff]  ;;  %v84_v48 = vld [vmem:[#allocation5 + $0x100] sm:$0xff]  ;;  %v86_v49 = vld [vmem:[#allocation5 + $0x110] sm:$0xff] }
  0x2b   :  { %v77_v50 = vld [vmem:[#allocation5 + $0xc8] sm:$0xff]  ;;  %v79_v51 = vld [vmem:[#allocation5 + $0xd8] sm:$0xff]  ;;  %v76_v52 = vld [vmem:[#allocation5 + $0xc0] sm:$0xff] }
  0x2c   :  { %189 = vmatpush1.xpose.msra.mxu0 %v140_v18  ;;  %259 = vmatpush1.xpose.msra.mxu1 %v142_v19  ;;  %v78_v53 = vld [vmem:[#allocation5 + $0xd0] sm:$0xff]  ;;  %v69_v54 = vld [vmem:[#allocation5 + $0x88] sm:$0xff]  ;;  %v71_v55 = vld [vmem:[#allocation5 + $0x98] sm:$0xff] }
  0x2d   :  { %190 = vmatprep.subr.mxu0 %v133_v20  ;;  %260 = vmatprep.subr.mxu1 %v135_v21  ;;  %v68_v56 = vld [vmem:[#allocation5 + $0x80] sm:$0xff]  ;;  %v70_v57 = vld [vmem:[#allocation5 + $0x90] sm:$0xff]  ;;  %v61_v58 = vld [vmem:[#allocation5 + $0x48] sm:$0xff] }
  0x2e   :  { %v63_v59 = vld [vmem:[#allocation5 + $0x58] sm:$0xff]  ;;  %v60_v60 = vld [vmem:[#allocation5 + $0x40] sm:$0xff]  ;;  %v62_v61 = vld [vmem:[#allocation5 + $0x50] sm:$0xff] }
  0x2f   :  { %v53_v62 = vld [vmem:[#allocation5 + $0x8] sm:$0xff]  ;;  %v55_v63 = vld [vmem:[#allocation5 + $0x18] sm:$0xff]  ;;  %v52_v0 = vld [vmem:[#allocation5] sm:$0xff] }
  0x30   :  { %191 = vmatpush1.xpose.msra.mxu0 %v132_v22  ;;  %261 = vmatpush1.xpose.msra.mxu1 %v134_v23  ;;  %v54_v1 = vld [vmem:[#allocation5 + $0x10] sm:$0xff]  ;;  %v177_v2 = vld [vmem:[#allocation5 + $0x3e8] sm:$0xff]  ;;  %v179_v3 = vld [vmem:[#allocation5 + $0x3f8] sm:$0xff] }
  0x31   :  { %192 = vmatprep.subr.mxu0 %v125_v24  ;;  %262 = vmatprep.subr.mxu1 %v127_v25  ;;  %v44_v4 = vld [vmem:[#allocation2] sm:$0xff]  ;;  %v46_v5 = vld [vmem:[#allocation2 + $0x10] sm:$0xff]  ;;  %v169_v8 = vld [vmem:[#allocation5 + $0x3a8] sm:$0xff] }
  0x32   :  { %v176_v6 = vld [vmem:[#allocation5 + $0x3e0] sm:$0xff]  ;;  %v178_v7 = vld [vmem:[#allocation5 + $0x3f0] sm:$0xff]  ;;  %v171_v9 = vld [vmem:[#allocation5 + $0x3b8] sm:$0xff] }
  0x33   :  { %v49_v10 = vld [vmem:[#allocation2 + $0x28] sm:$0xff]  ;;  %v51_v11 = vld [vmem:[#allocation2 + $0x38] sm:$0xff]  ;;  %v168_v12 = vld [vmem:[#allocation5 + $0x3a0] sm:$0xff] }
  0x34   :  { %193 = vmatpush1.xpose.msra.mxu0 %v124_v28  ;;  %263 = vmatpush1.xpose.msra.mxu1 %v126_v29  ;;  %v170_v13 = vld [vmem:[#allocation5 + $0x3b0] sm:$0xff]  ;;  %v161_v14 = vld [vmem:[#allocation5 + $0x368] sm:$0xff]  ;;  %v163_v15 = vld [vmem:[#allocation5 + $0x378] sm:$0xff] }
  0x35   :  { %194 = vmatprep.subr.mxu0 %v117_v30  ;;  %264 = vmatprep.subr.mxu1 %v119_v31  ;;  %v160_v16 = vld [vmem:[#allocation5 + $0x360] sm:$0xff]  ;;  %v162_v17 = vld [vmem:[#allocation5 + $0x370] sm:$0xff]  ;;  %v153_v18 = vld [vmem:[#allocation5 + $0x328] sm:$0xff] }
  0x36   :  { %v155_v19 = vld [vmem:[#allocation5 + $0x338] sm:$0xff]  ;;  %v152_v20 = vld [vmem:[#allocation5 + $0x320] sm:$0xff]  ;;  %v154_v21 = vld [vmem:[#allocation5 + $0x330] sm:$0xff] }
  0x37   :  { %v145_v22 = vld [vmem:[#allocation5 + $0x2e8] sm:$0xff]  ;;  %v147_v23 = vld [vmem:[#allocation5 + $0x2f8] sm:$0xff]  ;;  %v144_v24 = vld [vmem:[#allocation5 + $0x2e0] sm:$0xff] }
  0x38   :  { %195 = vmatpush1.xpose.msra.mxu0 %v116_v32  ;;  %265 = vmatpush1.xpose.msra.mxu1 %v118_v33  ;;  %v146_v25 = vld [vmem:[#allocation5 + $0x2f0] sm:$0xff]  ;;  %v137_v26 = vld [vmem:[#allocation5 + $0x2a8] sm:$0xff]  ;;  %v139_v27 = vld [vmem:[#allocation5 + $0x2b8] sm:$0xff] }
  0x39   :  { %196 = vmatprep.subr.mxu0 %v109_v34  ;;  %266 = vmatprep.subr.mxu1 %v111_v35  ;;  %v136_v28 = vld [vmem:[#allocation5 + $0x2a0] sm:$0xff]  ;;  %v138_v29 = vld [vmem:[#allocation5 + $0x2b0] sm:$0xff]  ;;  %v129_v30 = vld [vmem:[#allocation5 + $0x268] sm:$0xff] }
  0x3a   :  { %v131_v31 = vld [vmem:[#allocation5 + $0x278] sm:$0xff]  ;;  %v128_v32 = vld [vmem:[#allocation5 + $0x260] sm:$0xff]  ;;  %v130_v33 = vld [vmem:[#allocation5 + $0x270] sm:$0xff] }
  0x3b   :  { %v121_v34 = vld [vmem:[#allocation5 + $0x228] sm:$0xff]  ;;  %v123_v35 = vld [vmem:[#allocation5 + $0x238] sm:$0xff] }
  0x3c   :  { %197 = vmatpush1.xpose.msra.mxu0 %v108_v36  ;;  %267 = vmatpush1.xpose.msra.mxu1 %v110_v37  ;;  %v120_v36 = vld [vmem:[#allocation5 + $0x220] sm:$0xff]  ;;  %v122_v37 = vld [vmem:[#allocation5 + $0x230] sm:$0xff] }
  0x3d   :  { %198 = vmatprep.subr.mxu0 %v101_v38  ;;  %268 = vmatprep.subr.mxu1 %v103_v39  ;;  %v113_v38 = vld [vmem:[#allocation5 + $0x1e8] sm:$0xff]  ;;  %v115_v39 = vld [vmem:[#allocation5 + $0x1f8] sm:$0xff] }
  0x40   :  { %199 = vmatpush1.xpose.msra.mxu0 %v100_v40  ;;  %269 = vmatpush1.xpose.msra.mxu1 %v102_v41  ;;  %v112_v40 = vld [vmem:[#allocation5 + $0x1e0] sm:$0xff]  ;;  %v114_v41 = vld [vmem:[#allocation5 + $0x1f0] sm:$0xff] }
  0x41   :  { %200 = vmatprep.subr.mxu0 %v93_v42  ;;  %270 = vmatprep.subr.mxu1 %v95_v43  ;;  %v105_v42 = vld [vmem:[#allocation5 + $0x1a8] sm:$0xff]  ;;  %v107_v43 = vld [vmem:[#allocation5 + $0x1b8] sm:$0xff] }
  0x44   :  { %201 = vmatpush1.xpose.msra.mxu0 %v92_v44  ;;  %271 = vmatpush1.xpose.msra.mxu1 %v94_v45  ;;  %v104_v44 = vld [vmem:[#allocation5 + $0x1a0] sm:$0xff]  ;;  %v106_v45 = vld [vmem:[#allocation5 + $0x1b0] sm:$0xff] }
  0x45   :  { %202 = vmatprep.subr.mxu0 %v85_v46  ;;  %272 = vmatprep.subr.mxu1 %v87_v47  ;;  %v97_v46 = vld [vmem:[#allocation5 + $0x168] sm:$0xff]  ;;  %v99_v47 = vld [vmem:[#allocation5 + $0x178] sm:$0xff] }
  0x48   :  { %203 = vmatpush1.xpose.msra.mxu0 %v84_v48  ;;  %273 = vmatpush1.xpose.msra.mxu1 %v86_v49  ;;  %v96_v48 = vld [vmem:[#allocation5 + $0x160] sm:$0xff]  ;;  %v98_v49 = vld [vmem:[#allocation5 + $0x170] sm:$0xff] }
  0x49   :  { %204 = vmatprep.subr.mxu0 %v77_v50  ;;  %274 = vmatprep.subr.mxu1 %v79_v51  ;;  %v89_v50 = vld [vmem:[#allocation5 + $0x128] sm:$0xff]  ;;  %v91_v51 = vld [vmem:[#allocation5 + $0x138] sm:$0xff] }
  0x4c   :  { %205 = vmatpush1.xpose.msra.mxu0 %v76_v52  ;;  %275 = vmatpush1.xpose.msra.mxu1 %v78_v53  ;;  %v88_v52 = vld [vmem:[#allocation5 + $0x120] sm:$0xff]  ;;  %v90_v53 = vld [vmem:[#allocation5 + $0x130] sm:$0xff] }
  0x4d   :  { %206 = vmatprep.subr.mxu0 %v69_v54  ;;  %276 = vmatprep.subr.mxu1 %v71_v55  ;;  %v81_v54 = vld [vmem:[#allocation5 + $0xe8] sm:$0xff]  ;;  %v83_v55 = vld [vmem:[#allocation5 + $0xf8] sm:$0xff] }
  0x50   :  { %207 = vmatpush1.xpose.msra.mxu0 %v68_v56  ;;  %277 = vmatpush1.xpose.msra.mxu1 %v70_v57  ;;  %v80_v56 = vld [vmem:[#allocation5 + $0xe0] sm:$0xff]  ;;  %v82_v57 = vld [vmem:[#allocation5 + $0xf0] sm:$0xff] }
  0x51   :  { %208 = vmatprep.subr.mxu0 %v61_v58  ;;  %278 = vmatprep.subr.mxu1 %v63_v59  ;;  %v73_v58 = vld [vmem:[#allocation5 + $0xa8] sm:$0xff]  ;;  %v75_v59 = vld [vmem:[#allocation5 + $0xb8] sm:$0xff] }
  0x54   :  { %209 = vmatpush1.xpose.msra.mxu0 %v60_v60  ;;  %279 = vmatpush1.xpose.msra.mxu1 %v62_v61  ;;  %v72_v60 = vld [vmem:[#allocation5 + $0xa0] sm:$0xff]  ;;  %v74_v61 = vld [vmem:[#allocation5 + $0xb0] sm:$0xff] }
  0x55   :  { %210 = vmatprep.subr.mxu0 %v53_v62  ;;  %280 = vmatprep.subr.mxu1 %v55_v63  ;;  %v65_v62 = vld [vmem:[#allocation5 + $0x68] sm:$0xff]  ;;  %v67_v63 = vld [vmem:[#allocation5 + $0x78] sm:$0xff] }
  0x58   :  { %211 = vmatpush1.xpose.msra.mxu0 %v52_v0  ;;  %281 = vmatpush1.xpose.msra.mxu1 %v54_v1  ;;  %v64_v0 = vld [vmem:[#allocation5 + $0x60] sm:$0xff]  ;;  %v66_v1 = vld [vmem:[#allocation5 + $0x70] sm:$0xff] }
  0x59   :  { %320 = vmatprep.subr.mxu0 %v177_v2  ;;  %390 = vmatprep.subr.mxu1 %v179_v3  ;;  %v57_v2 = vld [vmem:[#allocation5 + $0x28] sm:$0xff]  ;;  %v59_v3 = vld [vmem:[#allocation5 + $0x38] sm:$0xff] }
  0x5b   :  { %245 = vmatmul.mubr.f32.vlgmr.msra.gmra.mxu0 %v44_v4  ;;  %315 = vmatmul.mubr.f32.vlgmr.msra.gmra.mxu1 %v46_v5  ;;  %v56_v4 = vld [vmem:[#allocation5 + $0x20] sm:$0xff]  ;;  %v58_v5 = vld [vmem:[#allocation5 + $0x30] sm:$0xff] }
  0x5c   :  { %321 = vmatpush1.xpose.msra.mxu0 %v176_v6  ;;  %391 = vmatpush1.xpose.msra.mxu1 %v178_v7  ;;  %v48_v6 = vld [vmem:[#allocation2 + $0x20] sm:$0xff]  ;;  %v50_v7 = vld [vmem:[#allocation2 + $0x30] sm:$0xff] }
  0x5d   :  { %322 = vmatprep.subr.mxu0 %v169_v8  ;;  %392 = vmatprep.subr.mxu1 %v171_v9 }
  0x5e   :  { %384 = vmatprep.mubr.f32.mxu0 %v49_v10  ;;  %454 = vmatprep.mubr.f32.mxu1 %v51_v11 }
  0x60   :  { %323 = vmatpush1.xpose.msra.mxu0 %v168_v12  ;;  %393 = vmatpush1.xpose.msra.mxu1 %v170_v13 }
  0x61   :  { %324 = vmatprep.subr.mxu0 %v161_v14  ;;  %394 = vmatprep.subr.mxu1 %v163_v15 }
  0x64   :  { %325 = vmatpush1.xpose.msra.mxu0 %v160_v16  ;;  %395 = vmatpush1.xpose.msra.mxu1 %v162_v17 }
  0x65   :  { %326 = vmatprep.subr.mxu0 %v153_v18  ;;  %396 = vmatprep.subr.mxu1 %v155_v19 }
  0x68   :  { %327 = vmatpush1.xpose.msra.mxu0 %v152_v20  ;;  %397 = vmatpush1.xpose.msra.mxu1 %v154_v21 }
  0x69   :  { %328 = vmatprep.subr.mxu0 %v145_v22  ;;  %398 = vmatprep.subr.mxu1 %v147_v23 }
  0x6c   :  { %329 = vmatpush1.xpose.msra.mxu0 %v144_v24  ;;  %399 = vmatpush1.xpose.msra.mxu1 %v146_v25 }
  0x6d   :  { %330 = vmatprep.subr.mxu0 %v137_v26  ;;  %400 = vmatprep.subr.mxu1 %v139_v27 }
  0x70   :  { %331 = vmatpush1.xpose.msra.mxu0 %v136_v28  ;;  %401 = vmatpush1.xpose.msra.mxu1 %v138_v29 }
  0x71   :  { %332 = vmatprep.subr.mxu0 %v129_v30  ;;  %402 = vmatprep.subr.mxu1 %v131_v31 }
  0x74   :  { %333 = vmatpush1.xpose.msra.mxu0 %v128_v32  ;;  %403 = vmatpush1.xpose.msra.mxu1 %v130_v33 }
  0x75   :  { %334 = vmatprep.subr.mxu0 %v121_v34  ;;  %404 = vmatprep.subr.mxu1 %v123_v35 }
  0x78   :  { %335 = vmatpush1.xpose.msra.mxu0 %v120_v36  ;;  %405 = vmatpush1.xpose.msra.mxu1 %v122_v37 }
  0x79   :  { %336 = vmatprep.subr.mxu0 %v113_v38  ;;  %406 = vmatprep.subr.mxu1 %v115_v39 }
  0x7c   :  { %337 = vmatpush1.xpose.msra.mxu0 %v112_v40  ;;  %407 = vmatpush1.xpose.msra.mxu1 %v114_v41 }
  0x7d   :  { %338 = vmatprep.subr.mxu0 %v105_v42  ;;  %408 = vmatprep.subr.mxu1 %v107_v43 }
  0x80   :  { %339 = vmatpush1.xpose.msra.mxu0 %v104_v44  ;;  %409 = vmatpush1.xpose.msra.mxu1 %v106_v45 }
  0x81   :  { %340 = vmatprep.subr.mxu0 %v97_v46  ;;  %410 = vmatprep.subr.mxu1 %v99_v47 }
  0x84   :  { %341 = vmatpush1.xpose.msra.mxu0 %v96_v48  ;;  %411 = vmatpush1.xpose.msra.mxu1 %v98_v49 }
  0x85   :  { %342 = vmatprep.subr.mxu0 %v89_v50  ;;  %412 = vmatprep.subr.mxu1 %v91_v51 }
  0x88   :  { %343 = vmatpush1.xpose.msra.mxu0 %v88_v52  ;;  %413 = vmatpush1.xpose.msra.mxu1 %v90_v53 }
  0x89   :  { %344 = vmatprep.subr.mxu0 %v81_v54  ;;  %414 = vmatprep.subr.mxu1 %v83_v55 }
  0x8c   :  { %345 = vmatpush1.xpose.msra.mxu0 %v80_v56  ;;  %415 = vmatpush1.xpose.msra.mxu1 %v82_v57 }
  0x8d   :  { %346 = vmatprep.subr.mxu0 %v73_v58  ;;  %416 = vmatprep.subr.mxu1 %v75_v59 }
  0x90   :  { %347 = vmatpush1.xpose.msra.mxu0 %v72_v60  ;;  %417 = vmatpush1.xpose.msra.mxu1 %v74_v61 }
  0x91   :  { %348 = vmatprep.subr.mxu0 %v65_v62  ;;  %418 = vmatprep.subr.mxu1 %v67_v63 }
  0x94   :  { %349 = vmatpush1.xpose.msra.mxu0 %v64_v0  ;;  %419 = vmatpush1.xpose.msra.mxu1 %v66_v1 }
  0x95   :  { %350 = vmatprep.subr.mxu0 %v57_v2  ;;  %420 = vmatprep.subr.mxu1 %v59_v3 }
  0x98   :  { %351 = vmatpush1.xpose.msra.mxu0 %v56_v4  ;;  %421 = vmatpush1.xpose.msra.mxu1 %v58_v5 }
  0x9b   :  { %385 = vmatmul.mubr.f32.vlgmr.msra.gmra.mxu0 %v48_v6  ;;  %455 = vmatmul.mubr.f32.vlgmr.msra.gmra.mxu1 %v50_v7 }
 0x11b   :  { %v246_v8 = vpop.f32.mrf.mxu0  ;;  %v316_v9 = vpop.f32.mrf.mxu1 }
 0x11c   :  { %v317_v12 = vadd.f32 %v316_v9, %v246_v8 }
 0x11d   :  { %v248_v10 = vpop.f32.mrf.mxu0  ;;  %v318_v11 = vpop.f32.mrf.mxu1 }
 0x15b   :  { %v386_v13 = vpop.f32.mrf.mxu0  ;;  %v456_v14 = vpop.f32.mrf.mxu1 }
 0x15c   :  { %v387_v15 = vadd.f32 %v386_v13, %v317_v12 }
 0x15d   :  { %v388_v16 = vpop.f32.mrf.mxu0  ;;  %v458_v17 = vpop.f32.mrf.mxu1 }
 0x15e   :  { %v457_v18 = vadd.f32 %v456_v14, %v387_v15 }
 0x160   :  { %461 = vst [vmem:[#allocation7] sm:$0xff] %v457_v18 }
 0x161   :  { %535 = shalt.err (!%p532_p0)
}
 0x162   :  { %471 = dma.vmem_to_hbm [thread:$0]  %s469_s1, 128, %s581_s2, [#allocation4]  }
 0x163   :  { %548 = dma.done.wait [#allocation4], 128  }
 0x164   :  { %549 = vsyncadd [#allocation4], 4294967168 }
 0x165   :  { %475 = vsyncpa [#allocation3], 1 }
 0x166   :  { %476 = vsyncpa [#allocation6], 1 }
 0x167   :  { %477 = vsyncpa [#allocation4], 1 }

</bundles_post_ra>
